<compile_context>
chip_gen: v7x
topology: tpu7x:2x2x1
jax: 0.10.0
libtpu: 0.0.40
codegen_flags: <defaults>
</compile_context>

<pallas_src>
import jax
import jax.numpy as jnp
from jax.experimental import pallas as pl
from jax.experimental.pallas import tpu as pltpu


def decomp_dqn_kernel(x_ref, w_ref, qw_ref, sel_ref, decomp_ref, qover_ref):
    # x_ref:      [bb, S]      batch tile of states
    # w_ref:      [S, R*A]     all per-reward-type linear weights (r-major, a-minor)
    # qw_ref:     [1, R*A]     1x1 linear weights, same flattening order
    # sel_ref:    [R*A, A]     static 0/1 group-sum matrix (column r*A+a -> action a)
    # decomp_ref: [bb, R*A]    per-reward-type Q values (lane-dense slab)
    # qover_ref:  [bb, A]      sigmoid-weighted sum over reward types

    # Single fused MXU matmul for all reward types: [bb,S] x [S,R*A] -> [bb,R*A].
    qflat = jnp.dot(x_ref[...], w_ref[...], preferred_element_type=jnp.float32)
    decomp_ref[...] = qflat.astype(decomp_ref.dtype)

    # One EUP sigmoid over all (reward_type, action) weights.
    sig = jax.nn.sigmoid(qw_ref[...])            # [1, R*A]
    prod = qflat * sig                           # [bb, R*A], VPU

    # Reduce over reward types with a second (tiny) MXU matmul against the
    # static 0/1 selector -- no cross-lane shuffles, MXU slot is otherwise idle.
    qover_ref[...] = jnp.dot(
        prod, sel_ref[...], preferred_element_type=jnp.float32
    ).astype(qover_ref.dtype)


def _round_up(x, m):
    return ((x + m - 1) // m) * m


def _pick_batch_tile(B):
    # Fixed large tile for HBM-roofline efficiency (guide: >=512 rows ~85% of
    # roofline), capped at ceil(B/2) so the grid has >= 2 steps whenever B > 8
    # and both v7x TensorCores get work.  Ragged last block is handled by
    # Pallas edge masking, so no divisor search is needed.
    BIG = 1024
    if B <= 8:
        return 8
    half = -(-B // 2)                      # ceil(B / 2)
    return min(BIG, _round_up(half, 8))


def decomp_dqn_forward(x, w_rsa, qw_ra):
    """x: [B, S] f32, w_rsa: [R, S, A] f32 (W_r already transposed), qw_ra: [R, A] f32."""
    B, S = x.shape
    R, _, A = w_rsa.shape
    RA = R * A

    # Flatten the reward-type axis into the lane (action) axis: column = r*A + a.
    w_flat = jnp.reshape(jnp.transpose(w_rsa, (1, 0, 2)), (S, RA))      # [S, R*A]
    qw_flat = jnp.reshape(qw_ra, (1, RA))                               # [1, R*A]
    # Static 0/1 group-sum matrix: column r*A + a contributes to action a.
    sel = (
        jnp.arange(RA, dtype=jnp.int32)[:, None] % A
        == jnp.arange(A, dtype=jnp.int32)[None, :]
    ).astype(jnp.float32)                                               # [R*A, A]

    bb = _pick_batch_tile(B)
    steps = pl.cdiv(B, bb)
    grid = (steps,)

    itemsize = 4
    bp = steps * bb  # padded batch rows actually processed by the grid
    cost = pl.CostEstimate(
        flops=2 * bp * S * RA + bp * RA + 2 * bp * RA * A,
        transcendentals=RA * steps,
        bytes_accessed=(bp * S + S * RA + RA + RA * A + bp * RA + bp * A) * itemsize,
    )

    decomp_flat, q_overall = pl.pallas_call(
        decomp_dqn_kernel,
        out_shape=(
            jax.ShapeDtypeStruct((B, RA), jnp.float32),
            jax.ShapeDtypeStruct((B, A), jnp.float32),
        ),
        grid=grid,
        in_specs=[
            pl.BlockSpec((bb, S), lambda i: (i, 0)),      # batch tile of x
            pl.BlockSpec((S, RA), lambda i: (0, 0)),      # weights: constant block, VMEM-resident
            pl.BlockSpec((1, RA), lambda i: (0, 0)),      # qw: constant block
            pl.BlockSpec((RA, A), lambda i: (0, 0)),      # selector: constant block
        ],
        out_specs=(
            pl.BlockSpec((bb, RA), lambda i: (i, 0)),     # lane-dense decomp slab
            pl.BlockSpec((bb, A), lambda i: (i, 0)),
        ),
        compiler_params=pltpu.CompilerParams(
            dimension_semantics=("parallel",),            # batch tiles independent (v7x 2-TC sharding)
        ),
        cost_estimate=cost,
    )(x, w_flat, qw_flat, sel)

    # PyTorch returns decomp_q as [B, R, A]; this reshape is free (order matches).
    decomp_q = jnp.reshape(decomp_flat, (B, R, A))
    return decomp_q, q_overall


def reference_forward(x, w_rsa, qw_ra):
    # Pure-JAX reference of the PyTorch forward (r_type=None branch).
    decomp = jnp.einsum("bs,rsa->bra", x, w_rsa)                 # [B, R, A]
    weighted = jax.nn.sigmoid(qw_ra)[None, :, :]                 # [1, R, A]
    q_overall = jnp.sum(decomp * weighted, axis=1)               # [B, A]
    return decomp, q_overall


if __name__ == "__main__":
    # Small shapes consistent with the module:
    #   state_size = 32, reward_types = 3, actions = 4, batch = 8
    B, S, R, A = 8, 32, 3, 4

    key = jax.random.PRNGKey(0)
    kx, kw = jax.random.split(key)

    x = jax.random.normal(kx, (B, S), dtype=jnp.float32)

    # Per-reward-type Linear(state_size, A, bias=False) weights; PyTorch stores [A, S].
    # (__init__ fills these with 0; we use a deterministic random init so the
    #  kernel computes something non-trivial.)
    w_as = 0.1 * jax.random.normal(kw, (R, A, S), dtype=jnp.float32)
    w_rsa = jnp.transpose(w_as, (0, 2, 1))                       # [R, S, A] for the kernel

    # Per-(action, reward_type) Linear(1, 1, bias=False) weights, filled with -5 as in __init__.
    qw_ra = jnp.full((R, A), -5.0, dtype=jnp.float32)

    decomp_q, q_overall = decomp_dqn_forward(x, w_rsa, qw_ra)
    jax.block_until_ready((decomp_q, q_overall))

    ref_decomp, ref_overall = reference_forward(x, w_rsa, qw_ra)
    assert decomp_q.shape == (B, R, A) and q_overall.shape == (B, A)
    assert jnp.allclose(decomp_q, ref_decomp, atol=1e-5, rtol=1e-5)
    assert jnp.allclose(q_overall, ref_overall, atol=1e-5, rtol=1e-5)

    print("KERNEL_OK")
</pallas_src>

<mosaic_0001>
module attributes {stable_mosaic.version = 11 : i64} {
  func.func @decomp_dqn_kernel(%arg0: i32, %arg1: memref<8x32xf32, #tpu.memory_space<vmem>>, %arg2: memref<32x12xf32, #tpu.memory_space<vmem>>, %arg3: memref<1x12xf32, #tpu.memory_space<vmem>>, %arg4: memref<12x4xf32, #tpu.memory_space<vmem>>, %arg5: memref<8x12xf32, #tpu.memory_space<vmem>>, %arg6: memref<8x4xf32, #tpu.memory_space<vmem>>) attributes {dimension_semantics = [#tpu.dimension_semantics<parallel>], iteration_bounds = array<i64: 1>, scalar_prefetch = 0 : i64, scratch_operands = 0 : i64, tpu.core_type = #tpu.core_type<tc>, window_params = [{transform_indices = @transform_0, window_bounds = array<i64: 8, 32>}, {pipeline_mode = #tpu.pipeline_mode<synchronous>, transform_indices = @transform_1, window_bounds = array<i64: 32, 12>}, {pipeline_mode = #tpu.pipeline_mode<synchronous>, transform_indices = @transform_2, window_bounds = array<i64: 1, 12>}, {pipeline_mode = #tpu.pipeline_mode<synchronous>, transform_indices = @transform_3, window_bounds = array<i64: 12, 4>}, {transform_indices = @transform_4, window_bounds = array<i64: 8, 12>}, {transform_indices = @transform_5, window_bounds = array<i64: 8, 4>}]} {
    %c0 = arith.constant 0 : index
    %c0_0 = arith.constant 0 : index
    %0 = vector.load %arg1[%c0, %c0_0] : memref<8x32xf32, #tpu.memory_space<vmem>>, vector<8x32xf32>
    %c0_1 = arith.constant 0 : index
    %c0_2 = arith.constant 0 : index
    %1 = vector.load %arg2[%c0_1, %c0_2] : memref<32x12xf32, #tpu.memory_space<vmem>>, vector<32x12xf32>
    %cst = arith.constant dense<0.000000e+00> : vector<8x12xf32>
    %2 = tpu.matmul %0, %1, %cst {dimension_numbers = #tpu.dot_dimension_numbers<[1], [0], [0], [1], [0, 0, 1, 1], [], []>} : vector<8x32xf32>, vector<32x12xf32>, vector<8x12xf32> -> vector<8x12xf32>
    %c0_3 = arith.constant 0 : index
    %c0_4 = arith.constant 0 : index
    %3 = vector.load %arg5[%c0_3, %c0_4] : memref<8x12xf32, #tpu.memory_space<vmem>>, vector<8x12xf32>
    tpu.vector_store %arg5[%c0_3, %c0_4], %2 {strides = array<i32>} : memref<8x12xf32, #tpu.memory_space<vmem>>, vector<8x12xf32>,
    %c0_5 = arith.constant 0 : index
    %c0_6 = arith.constant 0 : index
    %4 = vector.load %arg3[%c0_5, %c0_6] : memref<1x12xf32, #tpu.memory_space<vmem>>, vector<1x12xf32>
    %5 = arith.negf %4 : vector<1x12xf32>
    %6 = math.exp %5 : vector<1x12xf32>
    %cst_7 = arith.constant 1.000000e+00 : f32
    %7 = vector.broadcast %cst_7 : f32 to vector<1x12xf32>
    %8 = arith.addf %7, %6 : vector<1x12xf32>
    %9 = arith.divf %7, %8 : vector<1x12xf32>
    %10 = vector.broadcast %9 : vector<1x12xf32> to vector<8x12xf32>
    %11 = arith.mulf %2, %10 : vector<8x12xf32>
    %c0_8 = arith.constant 0 : index
    %c0_9 = arith.constant 0 : index
    %12 = vector.load %arg4[%c0_8, %c0_9] : memref<12x4xf32, #tpu.memory_space<vmem>>, vector<12x4xf32>
    %cst_10 = arith.constant dense<0.000000e+00> : vector<8x4xf32>
    %13 = tpu.matmul %11, %12, %cst_10 {dimension_numbers = #tpu.dot_dimension_numbers<[1], [0], [0], [1], [0, 0, 1, 1], [], []>} : vector<8x12xf32>, vector<12x4xf32>, vector<8x4xf32> -> vector<8x4xf32>
    %c0_11 = arith.constant 0 : index
    %c0_12 = arith.constant 0 : index
    %14 = vector.load %arg6[%c0_11, %c0_12] : memref<8x4xf32, #tpu.memory_space<vmem>>, vector<8x4xf32>
    tpu.vector_store %arg6[%c0_11, %c0_12], %13 {strides = array<i32>} : memref<8x4xf32, #tpu.memory_space<vmem>>, vector<8x4xf32>,
    return
  }
  func.func @transform_0(%arg0: i32) -> (i32, i32) {
    %c0_i32 = arith.constant 0 : i32
    %c0_i32_0 = arith.constant 0 : i32
    return %arg0, %c0_i32 : i32, i32
  }
  func.func @transform_1(%arg0: i32) -> (i32, i32) {
    %c0_i32 = arith.constant 0 : i32
    %c0_i32_0 = arith.constant 0 : i32
    %c0_i32_1 = arith.constant 0 : i32
    return %c0_i32, %c0_i32_0 : i32, i32
  }
  func.func @transform_2(%arg0: i32) -> (i32, i32) {
    %c0_i32 = arith.constant 0 : i32
    %c0_i32_0 = arith.constant 0 : i32
    %c0_i32_1 = arith.constant 0 : i32
    return %c0_i32, %c0_i32_0 : i32, i32
  }
  func.func @transform_3(%arg0: i32) -> (i32, i32) {
    %c0_i32 = arith.constant 0 : i32
    %c0_i32_0 = arith.constant 0 : i32
    %c0_i32_1 = arith.constant 0 : i32
    return %c0_i32, %c0_i32_0 : i32, i32
  }
  func.func @transform_4(%arg0: i32) -> (i32, i32) {
    %c0_i32 = arith.constant 0 : i32
    %c0_i32_0 = arith.constant 0 : i32
    return %arg0, %c0_i32 : i32, i32
  }
  func.func @transform_5(%arg0: i32) -> (i32, i32) {
    %c0_i32 = arith.constant 0 : i32
    %c0_i32_0 = arith.constant 0 : i32
    return %arg0, %c0_i32 : i32, i32
  }
}

</mosaic_0001>

<bundles_post_ra>
// kernel: tpu_custom_call.1
= control target key start
LH: loop header
LB: loop body
LE: loop exit
PB: predicated region body
PF: predicated region fallthrough
CT: control target
= control target key end

     0   :  { %v287_v3 = vmov 0.0|0.0   ;;  %vm288_vm0 = vmmov 0   ;;  %v289_v6 = vmov 0.0   ;;  %s361_s0 = inlined_call_operand.vmem [shape: f32[8,32], index: 0, kind: input, shape index: {}]   ;;  %s362_s1 = inlined_call_operand.vmem [shape: f32[32,12], index: 1, kind: input, shape index: {}]   ;;  %s363_s2 = inlined_call_operand.vmem [shape: f32[1,12], index: 2, kind: input, shape index: {}]   ;;  %s364_s3 = inlined_call_operand.vmem [shape: f32[12,4], index: 3, kind: input, shape index: {}]   ;;  %s365_s4 = inlined_call_operand.hbm [shape: f32[8,12], index: 4, kind: output, shape index: {0}]   ;;  %s366_s5 = inlined_call_operand.vmem [shape: f32[8,4], index: 5, kind: output, shape index: {1}]  }
   0x1   :  { %v21_v0 = vld [vmem:[%s362_s1] sm:$0xff]  ;;  %v22_v1 = vld [vmem:[%s362_s1 + $0x8] sm:$0xff]  ;;  %v23_v2 = vld [vmem:[%s362_s1 + $0x10] sm:$0xff]  ;;  %244 = vmatprep.subr.bf16.mxu0 %v287_v3  ;;  %234 = vmatprep.mubr.msk.f32.mxu0 %vm288_vm0, %v289_v6 }
   0x2   :  { %v245_v4 = vpack.c.bf16 %v22_v1, %v21_v0  ;;  %v24_v5 = vld [vmem:[%s362_s1 + $0x18] sm:$0xff] }
   0x3   :  { %11 = vsyncpa [#allocation3], 0  ;;  %250 = vmatprep.subr.bf16.mxu1 %v287_v3  ;;  %241 = vmatprep.mubr.msk.f32.mxu1 %vm288_vm0, %v289_v6  ;;  %v248_v7 = vpack.c.bf16 %v24_v5, %v23_v2  ;;  %v20_v8 = vld [vmem:[%s361_s0] sm:$0xff]  ;;  %vm25_vm1 = vcmask 261120   ;;  %v116_v10 = vld [vmem:[%s364_s3 + $0x8] sm:$0xf]  ;;  %v109_v16 = vlaneseq }
   0x4   :  { %246 = vmatpush3.bf16.msra.mxu0 %v245_v4  ;;  %v115_v9 = vld [vmem:[%s364_s3] sm:$0xff]  ;;  %vm120_vm2 = vcmask 1043456   ;;  %vm290_vm3 = vmmov 1   ;;  %vm99_vm5 = vcmask 97280   ;;  %s291_s0 = smov [#allocation2]  }
   0x5   :  { %247 = vmatprep.subr.bf16.mxu0 %v287_v3  ;;  %v251_v11 = vpack.c.bf16 %v116_v10, %v115_v9  ;;  %vm252_vm4 = vmpackc.low %vm120_vm2, %vm290_vm3  ;;  %v101_v12 = vld [vmem:[%s363_s2] sm:$0x1]  ;;  %v110_v17 = vshrl.u32 %v109_v16, 7  ;;  %s202_s3 = sshll.u32 %s291_s0, 4  ;;  %s203_s3 = int_to_ptr.vmem [resolvable:$true] %s202_s3 }
   0x6   :  { %v215_v13 = vmul.f32 -1.442695, %v101_v12  ;;  %s263_s2 = scalar_lea.vmem %s203_s3, 128  ;;  %p268_p1 = scmp.lt.s32.totalorder %s203_s3, %s203_s3 }
   0x7   :  { %253 = vmatpush3.bf16.msk.msra.mxu1 %vm252_vm4, %v251_v11  ;;  %v111_v18 = vsub.s32 0, %v110_v17  ;;  %p264_p0 = scmp.ne.s32.totalorder %s203_s3, %s263_s2  ;;  %p269_p2 = scmp.lt.s32.totalorder %s263_s2, %s263_s2 }
   0x8   :  { %249 = vmatpush3.bf16.msra.mxu0 %v248_v7  ;;  %259 = vpow2.f32 %v215_v13 }
   0x9   :  { %p270_p3 = por %p269_p2, %p268_p1 }
   0xb   :  { %235 = vmatmul.mubr.msk.f32.vlgmr.msra.gmra.mrb[0].mxu0 %vm25_vm1, %v20_v8  ;;  %p271_p4 = pnand %p270_p3, %p264_p0 }
  0x12   :  { %v260_v14 = vpop.eup %259 }
  0x13   :  { %v105_v15 = vadd.f32 1.0, %v260_v14 }
  0x15   :  { %261 = vrcp.f32 %v105_v15 }
  0x1f   :  { %v262_v19 = vpop.eup %261 }
  0x20   :  { %v112_v20 = vrot.slane %v262_v19, %v111_v18 }
  0xde   :  { %v95_v21 = vpop.f32.mrb[0].mxu0 }
  0xdf   :  { %v114_v22 = vmul.f32 %v112_v20, %v95_v21  ;;  %v236_v23 = vpop.f32.mrb[1].mxu0  ;;  %100 = vst.msk [vmem:[#allocation2] sm:$0xff] %vm99_vm5, %v95_v21 }
  0xe1   :  { %242 = vmatmul.mubr.msk.f32.vlgmr.msra.gmra.mrb[0].mxu1 %vm99_vm5, %v114_v22 }
  0xe2   :  { %274 = shalt.err (!%p271_p4)
}
  0xe3   :  { %s275_s10 = scalar_lea.hbm %s365_s4, 128 }
  0xe4   :  { %p276_p5 = scmp.ne.s32.totalorder %s365_s4, %s275_s10  ;;  %p279_p6 = scmp.lt.u32.totalorder %s275_s10, %s365_s4 }
  0xe6   :  { %p281_p7 = pnand %p279_p6, %p276_p5 }
  0xe8   :  { %284 = shalt.err (!%p281_p7)
}
  0xe9   :  { %205 = dma.vmem_to_hbm [thread:$0]  %s203_s3, 128, %s365_s4, [#allocation3]   ;;  %vm194_vm6 = vcmask 31744  }
 0x1b4   :  { %v190_v24 = vpop.f32.mrb[0].mxu1 }
 0x1b5   :  { %195 = vst.msk [vmem:[%s366_s5] sm:$0xff] %vm194_vm6, %v190_v24  ;;  %v243_v25 = vpop.f32.mrb[1].mxu1 }
 0x1b6   :  { %285 = dma.done.wait [#allocation3], 128  }
 0x1b7   :  { %286 = vsyncadd [#allocation3], 4294967168 }
 0x1b8   :  { %213 = vsyncpa [#allocation3], 1 }

</bundles_post_ra>
